<compile_context>
chip_gen: v7x
topology: tpu7x:2x2x1
jax: 0.10.0
libtpu: 0.0.40
codegen_flags: <defaults>
</compile_context>

<pallas_src>
import functools

import jax
import jax.numpy as jnp
from jax.experimental import pallas as pl
from jax.experimental.pallas import tpu as pltpu

# ----------------------------- configuration --------------------------------
VOXEL_SIZE = (0.4, 0.4, 4.0)
LIDAR_RANGE = (0.0, 0.0, -3.0, 6.4, 6.4, 1.0)
NX = int(round((LIDAR_RANGE[3] - LIDAR_RANGE[0]) / VOXEL_SIZE[0]))  # 16
NY = int(round((LIDAR_RANGE[4] - LIDAR_RANGE[1]) / VOXEL_SIZE[1]))  # 16
C_PILLAR = 64            # PillarVFE output channels (scatter channels)
HEAD_EMBED = 64          # args['head_embed_dims']
ANCHOR_NUM = 2           # args['anchor_number']
MAX_POINTS = 8           # max points per pillar
NUM_PILLARS = 64
BN_EPS = 1e-3
PFN_K_PAD = 128          # pad the 10-wide PFN contraction to a full 128-lane MXU pass


# ----------------------------- Pallas kernels --------------------------------
def _pfn_kernel(x_ref, w_ref, scale_ref, bias_ref, o_ref, *, num_points, num_pillars):
    """PFN layer: one matmul over all (point, pillar) rows -> folded BN -> ReLU -> max over points.

    x rows are point-major (row = m * num_pillars + p), so the per-point blocks are
    8-aligned static sublane slices and the max is num_points-1 elementwise maxima.
    """
    y = jnp.dot(x_ref[...], w_ref[...], preferred_element_type=jnp.float32)   # (MP*P, COUT)
    y = jnp.maximum(y * scale_ref[...] + bias_ref[...], 0.0)                  # f32 epilogue
    acc = y[0:num_pillars]
    for m in range(1, num_points):
        acc = jnp.maximum(acc, y[m * num_pillars:(m + 1) * num_pillars])
    o_ref[...] = acc


def pillar_vfe_pfn(feats10_masked, w, scale, bias):
    """feats10_masked: [P, MP, 10] f32 (mask already applied). Returns [P, 64] f32."""
    P, MP, CIN = feats10_masked.shape
    COUT = w.shape[1]
    # point-major rows, contraction padded to 128 lanes, bf16 MXU operands
    x = feats10_masked.transpose(1, 0, 2).reshape(MP * P, CIN)
    x = jnp.pad(x, ((0, 0), (0, PFN_K_PAD - CIN))).astype(jnp.bfloat16)
    wp = jnp.pad(w, ((0, PFN_K_PAD - CIN), (0, 0))).astype(jnp.bfloat16)
    kern = functools.partial(_pfn_kernel, num_points=MP, num_pillars=P)
    return pl.pallas_call(
        kern,
        out_shape=jax.ShapeDtypeStruct((P, COUT), jnp.float32),
        grid_spec=pltpu.PrefetchScalarGridSpec(
            num_scalar_prefetch=0,
            grid=(1,),
            in_specs=[
                pl.BlockSpec((MP * P, PFN_K_PAD), lambda i: (0, 0)),
                pl.BlockSpec((PFN_K_PAD, COUT), lambda i: (0, 0)),
                pl.BlockSpec((1, COUT), lambda i: (0, 0)),
                pl.BlockSpec((1, COUT), lambda i: (0, 0)),
            ],
            out_specs=pl.BlockSpec((P, COUT), lambda i: (0, 0)),
        ),
        compiler_params=pltpu.CompilerParams(dimension_semantics=("arbitrary",)),
    )(x, wp, scale.reshape(1, COUT), bias.reshape(1, COUT))


def _backbone_heads_kernel(bev_ref, wtap_ref, bnscale_ref, bnbias_ref,
                           headw_ref, headb_ref,
                           single_out_ref, fused_out_ref, acc_ref,
                           *, n_agents, ny, nx, sample_slices):
    """Fused: 3x3 conv(+BN+ReLU) per agent, per-sample agent max, cls+reg heads.

    Everything stays VMEM-resident: padded BEV in, head logits out.
    """
    hw = ny * nx
    # ---- 3x3 conv as 9 accumulating MXU pushes on shifted in-VMEM slices ----
    for t in range(9):
        ky, kx = t // 3, t % 3
        xs = bev_ref[:, ky:ky + ny, kx:kx + nx, :]                 # (N, ny, nx, Cin) f32
        xs2 = xs.reshape(n_agents * hw, xs.shape[-1]).astype(jnp.bfloat16)
        part = jnp.dot(xs2, wtap_ref[t], preferred_element_type=jnp.float32)
        if t == 0:
            acc_ref[...] = part
        else:
            acc_ref[...] += part
    # ---- folded BN + ReLU epilogue (f32) -> 'single_features' ----
    single = jnp.maximum(acc_ref[...] * bnscale_ref[...] + bnbias_ref[...], 0.0)
    acc_ref[...] = single          # keep f32 single features VMEM-resident for the fused max
    headw = headw_ref[...]         # (COUT, 16) bf16: [cls(2) | reg(14)]
    headb = headb_ref[...]         # (1, 16) f32
    # ---- heads on single_features (cls + reg fused into one 16-wide matmul) ----
    single_out_ref[...] = (
        jnp.dot(single.astype(jnp.bfloat16), headw, preferred_element_type=jnp.float32)
        + headb)
    # ---- per-sample max over agents, then heads on fused features ----
    for s, (start, length) in enumerate(sample_slices):
        fused = acc_ref[start * hw:(start + 1) * hw, :]
        for a in range(1, length):
            fused = jnp.maximum(fused, acc_ref[(start + a) * hw:(start + a + 1) * hw, :])
        fused_out_ref[s * hw:(s + 1) * hw, :] = (
            jnp.dot(fused.astype(jnp.bfloat16), headw, preferred_element_type=jnp.float32)
            + headb)


def backbone_and_heads(bev_nhwc, record_len, conv_w, bn_scale, bn_bias, head_w, head_b):
    """bev_nhwc: [N, H, W, Cin] f32. Returns (single_heads [N,H,W,16], fused_heads [B,H,W,16])."""
    N, H, W, Cin = bev_nhwc.shape
    Cout = conv_w.shape[-1]
    n_heads = head_w.shape[-1]
    B = len(record_len)
    hw = H * W
    # static per-sample agent slices from record_len (Python list)
    sample_slices, start = [], 0
    for l in record_len:
        sample_slices.append((start, int(l)))
        start += int(l)
    bev_pad = jnp.pad(bev_nhwc, ((0, 0), (1, 1), (1, 1), (0, 0)))          # f32, ~166 KB
    wtap = conv_w.reshape(9, Cin, Cout).astype(jnp.bfloat16)               # tap-major weights

    kern = functools.partial(_backbone_heads_kernel, n_agents=N, ny=H, nx=W,
                             sample_slices=tuple(sample_slices))
    single_out, fused_out = pl.pallas_call(
        kern,
        out_shape=(jax.ShapeDtypeStruct((N * hw, n_heads), jnp.float32),
                   jax.ShapeDtypeStruct((B * hw, n_heads), jnp.float32)),
        grid_spec=pltpu.PrefetchScalarGridSpec(
            num_scalar_prefetch=0,
            grid=(1,),
            in_specs=[
                pl.BlockSpec((N, H + 2, W + 2, Cin), lambda i: (0, 0, 0, 0)),
                pl.BlockSpec((9, Cin, Cout), lambda i: (0, 0, 0)),
                pl.BlockSpec((1, Cout), lambda i: (0, 0)),
                pl.BlockSpec((1, Cout), lambda i: (0, 0)),
                pl.BlockSpec((Cout, n_heads), lambda i: (0, 0)),
                pl.BlockSpec((1, n_heads), lambda i: (0, 0)),
            ],
            out_specs=[
                pl.BlockSpec((N * hw, n_heads), lambda i: (0, 0)),
                pl.BlockSpec((B * hw, n_heads), lambda i: (0, 0)),
            ],
            scratch_shapes=[pltpu.VMEM((N * hw, Cout), jnp.float32)],
        ),
        compiler_params=pltpu.CompilerParams(dimension_semantics=("arbitrary",)),
    )(bev_pad, wtap, bn_scale.reshape(1, Cout), bn_bias.reshape(1, Cout),
      head_w.astype(jnp.bfloat16), head_b.reshape(1, n_heads))
    return (single_out.reshape(N, H, W, n_heads),
            fused_out.reshape(B, H, W, n_heads))


# ----------------------------- model pieces ----------------------------------
def init_params(key):
    ks = jax.random.split(key, 8)
    p = {}
    # PillarVFE PFN: Linear(10 -> 64, bias=False) + BatchNorm1d(64)
    p['pfn_w'] = 0.1 * jax.random.normal(ks[0], (10, C_PILLAR), jnp.float32)
    p['pfn_bn_gamma'] = jnp.ones((C_PILLAR,), jnp.float32)
    p['pfn_bn_beta'] = jnp.zeros((C_PILLAR,), jnp.float32)
    p['pfn_bn_mean'] = 0.01 * jax.random.normal(ks[1], (C_PILLAR,), jnp.float32)
    p['pfn_bn_var'] = jnp.ones((C_PILLAR,), jnp.float32)
    # Backbone conv3x3 (bias=False) + BatchNorm2d
    p['bb_conv_w'] = 0.05 * jax.random.normal(ks[2], (3, 3, C_PILLAR, HEAD_EMBED), jnp.float32)
    p['bb_bn_gamma'] = jnp.ones((HEAD_EMBED,), jnp.float32)
    p['bb_bn_beta'] = jnp.zeros((HEAD_EMBED,), jnp.float32)
    p['bb_bn_mean'] = 0.01 * jax.random.normal(ks[3], (HEAD_EMBED,), jnp.float32)
    p['bb_bn_var'] = jnp.ones((HEAD_EMBED,), jnp.float32)
    # Heads: Conv2d(head_embed, anchor_num, 1) and Conv2d(head_embed, 7*anchor_num, 1)
    p['cls_w'] = 0.1 * jax.random.normal(ks[4], (HEAD_EMBED, ANCHOR_NUM), jnp.float32)
    p['cls_b'] = 0.01 * jax.random.normal(ks[5], (ANCHOR_NUM,), jnp.float32)
    p['reg_w'] = 0.1 * jax.random.normal(ks[6], (HEAD_EMBED, 7 * ANCHOR_NUM), jnp.float32)
    p['reg_b'] = 0.01 * jax.random.normal(ks[7], (7 * ANCHOR_NUM,), jnp.float32)
    return p


def point_pillar_deformable_forward(data, params):
    vf = data['voxel_features']        # [P, MP, 4] float32
    vc = data['voxel_coords']          # [P, 4] int32  (agent_batch, z, y, x)
    vn = data['voxel_num_points']      # [P] int32
    record_len = data['record_len']    # python list of ints (agents per sample)
    P, MP, _ = vf.shape

    # ---- PillarVFE feature augmentation (glue) ----
    pts_mask = (jnp.arange(MP)[None, :] < vn[:, None]).astype(jnp.float32)   # [P, MP]
    xyz = vf[..., :3]
    nvalid = jnp.maximum(vn, 1).astype(jnp.float32)[:, None, None]
    points_mean = jnp.sum(xyz * pts_mask[..., None], axis=1, keepdims=True) / nvalid
    f_cluster = xyz - points_mean
    vx, vy, vz = VOXEL_SIZE
    x_off = vx / 2.0 + LIDAR_RANGE[0]
    y_off = vy / 2.0 + LIDAR_RANGE[1]
    z_off = vz / 2.0 + LIDAR_RANGE[2]
    f_center = jnp.stack(
        [vf[..., 0] - (vc[:, 3].astype(jnp.float32)[:, None] * vx + x_off),
         vf[..., 1] - (vc[:, 2].astype(jnp.float32)[:, None] * vy + y_off),
         vf[..., 2] - (vc[:, 1].astype(jnp.float32)[:, None] * vz + z_off)],
        axis=-1)
    feats10 = jnp.concatenate([vf, f_cluster, f_center], axis=-1)            # [P, MP, 10]
    feats10 = feats10 * pts_mask[..., None]                                   # mask before PFN

    # ---- PFN layer (Pallas, single fused matmul) ----
    pfn_scale = params['pfn_bn_gamma'] / jnp.sqrt(params['pfn_bn_var'] + BN_EPS)
    pfn_bias = params['pfn_bn_beta'] - params['pfn_bn_mean'] * pfn_scale
    pillar_feat = pillar_vfe_pfn(feats10, params['pfn_w'], pfn_scale, pfn_bias)  # [P, 64]

    # ---- PointPillarScatter (glue): pillars -> BEV canvas, layout NHWC ----
    # TODO(synk): at production pillar counts this XLA scatter should become a Pallas
    # scatter (PrefetchScalarGridSpec + pl.Element row indexing); fine at 64 pillars.
    n_agents = int(sum(record_len))
    flat_idx = vc[:, 0] * (NY * NX) + vc[:, 2] * NX + vc[:, 3]
    canvas = jnp.zeros((n_agents * NY * NX, C_PILLAR), jnp.float32)
    canvas = canvas.at[flat_idx].set(pillar_feat)
    bev = canvas.reshape(n_agents, NY, NX, C_PILLAR)                         # [N, H, W, C]

    # ---- Backbone + agent-max fusion + heads: ONE fused Pallas kernel ----
    # TODO(synk): deformable attention / multi-scale projection of DeforBEVBackbone has
    # no available source; stand-in = conv3x3+BN+ReLU per agent + per-sample max fusion.
    bb_scale = params['bb_bn_gamma'] / jnp.sqrt(params['bb_bn_var'] + BN_EPS)
    bb_bias = params['bb_bn_beta'] - params['bb_bn_mean'] * bb_scale
    head_w = jnp.concatenate([params['cls_w'], params['reg_w']], axis=1)     # [64, 16]
    head_b = jnp.concatenate([params['cls_b'], params['reg_b']], axis=0)     # [16]
    single_heads, fused_heads = backbone_and_heads(
        bev, record_len, params['bb_conv_w'], bb_scale, bb_bias, head_w, head_b)

    # ---- split fused cls/reg columns and go NCHW only on the final tiny outputs ----
    psm = fused_heads[..., :ANCHOR_NUM].transpose(0, 3, 1, 2)
    rm = fused_heads[..., ANCHOR_NUM:].transpose(0, 3, 1, 2)
    output = {'cls_preds': psm, 'reg_preds': rm}

    # supervise_single=True, use_seperate_head=False -> same heads on single_features
    output['cls_preds_single'] = single_heads[..., :ANCHOR_NUM].transpose(0, 3, 1, 2)
    output['reg_preds_single'] = single_heads[..., ANCHOR_NUM:].transpose(0, 3, 1, 2)
    # use_dir=False, calibrate=False in this configuration.
    return output


# ----------------------------------- main ------------------------------------
if __name__ == "__main__":
    key = jax.random.PRNGKey(0)
    k_feat, k_num, k_param = jax.random.split(key, 3)

    P, MP = NUM_PILLARS, MAX_POINTS
    per_agent = P // 2
    # deterministic, unique pillar locations per agent
    flat0 = (jnp.arange(per_agent) * 5) % (NY * NX)
    flat1 = (jnp.arange(per_agent) * 7 + 3) % (NY * NX)
    coords = []
    for a, flat in enumerate([flat0, flat1]):
        y = (flat // NX).astype(jnp.int32)
        x = (flat % NX).astype(jnp.int32)
        coords.append(jnp.stack([jnp.full((per_agent,), a, jnp.int32),
                                 jnp.zeros((per_agent,), jnp.int32), y, x], axis=1))
    voxel_coords = jnp.concatenate(coords, axis=0)                           # [64, 4]
    voxel_num_points = jax.random.randint(k_num, (P,), 1, MP + 1).astype(jnp.int32)
    voxel_features = jax.random.normal(k_feat, (P, MP, 4), jnp.float32)

    data = {
        'voxel_features': voxel_features,
        'voxel_coords': voxel_coords,
        'voxel_num_points': voxel_num_points,
        'record_len': [2],                      # one sample with two agents
    }
    params = init_params(k_param)

    out = point_pillar_deformable_forward(data, params)
    jax.block_until_ready(out)

    assert out['cls_preds'].shape == (1, ANCHOR_NUM, NY, NX)
    assert out['reg_preds'].shape == (1, 7 * ANCHOR_NUM, NY, NX)
    assert out['cls_preds_single'].shape == (2, ANCHOR_NUM, NY, NX)
    assert out['reg_preds_single'].shape == (2, 7 * ANCHOR_NUM, NY, NX)
    print("KERNEL_OK")
</pallas_src>

<mosaic_0001>
module attributes {stable_mosaic.version = 11 : i64} {
  func.func @_pfn_kernel(%arg0: i32, %arg1: memref<512x128xbf16, #tpu.memory_space<vmem>>, %arg2: memref<128x64xbf16, #tpu.memory_space<vmem>>, %arg3: memref<1x64xf32, #tpu.memory_space<vmem>>, %arg4: memref<1x64xf32, #tpu.memory_space<vmem>>, %arg5: memref<64x64xf32, #tpu.memory_space<vmem>>) attributes {dimension_semantics = [#tpu.dimension_semantics<arbitrary>], iteration_bounds = array<i64: 1>, scalar_prefetch = 0 : i64, scratch_operands = 0 : i64, tpu.core_type = #tpu.core_type<tc>, window_params = [{pipeline_mode = #tpu.pipeline_mode<synchronous>, transform_indices = @transform_0, window_bounds = array<i64: 512, 128>}, {pipeline_mode = #tpu.pipeline_mode<synchronous>, transform_indices = @transform_1, window_bounds = array<i64: 128, 64>}, {pipeline_mode = #tpu.pipeline_mode<synchronous>, transform_indices = @transform_2, window_bounds = array<i64: 1, 64>}, {pipeline_mode = #tpu.pipeline_mode<synchronous>, transform_indices = @transform_3, window_bounds = array<i64: 1, 64>}, {pipeline_mode = #tpu.pipeline_mode<synchronous>, transform_indices = @transform_4, window_bounds = array<i64: 64, 64>}]} {
    %c0 = arith.constant 0 : index
    %c0_0 = arith.constant 0 : index
    %0 = vector.load %arg1[%c0, %c0_0] : memref<512x128xbf16, #tpu.memory_space<vmem>>, vector<512x128xbf16>
    %c0_1 = arith.constant 0 : index
    %c0_2 = arith.constant 0 : index
    %1 = vector.load %arg2[%c0_1, %c0_2] : memref<128x64xbf16, #tpu.memory_space<vmem>>, vector<128x64xbf16>
    %cst = arith.constant dense<0.000000e+00> : vector<512x64xf32>
    %2 = tpu.matmul %0, %1, %cst {dimension_numbers = #tpu.dot_dimension_numbers<[1], [0], [0], [1], [0, 0, 1, 1], [], []>} : vector<512x128xbf16>, vector<128x64xbf16>, vector<512x64xf32> -> vector<512x64xf32>
    %c0_3 = arith.constant 0 : index
    %c0_4 = arith.constant 0 : index
    %3 = vector.load %arg3[%c0_3, %c0_4] : memref<1x64xf32, #tpu.memory_space<vmem>>, vector<1x64xf32>
    %4 = vector.broadcast %3 : vector<1x64xf32> to vector<512x64xf32>
    %5 = arith.mulf %2, %4 : vector<512x64xf32>
    %c0_5 = arith.constant 0 : index
    %c0_6 = arith.constant 0 : index
    %6 = vector.load %arg4[%c0_5, %c0_6] : memref<1x64xf32, #tpu.memory_space<vmem>>, vector<1x64xf32>
    %7 = vector.broadcast %6 : vector<1x64xf32> to vector<512x64xf32>
    %8 = arith.addf %5, %7 : vector<512x64xf32>
    %cst_7 = arith.constant 0.000000e+00 : f32
    %9 = vector.broadcast %cst_7 : f32 to vector<512x64xf32>
    %10 = arith.maximumf %8, %9 : vector<512x64xf32>
    %11 = vector.extract_strided_slice %10 {offsets = [0, 0], sizes = [64, 64], strides = [1, 1]} : vector<512x64xf32> to vector<64x64xf32>
    %12 = vector.extract_strided_slice %10 {offsets = [64, 0], sizes = [64, 64], strides = [1, 1]} : vector<512x64xf32> to vector<64x64xf32>
    %13 = arith.maximumf %11, %12 : vector<64x64xf32>
    %14 = vector.extract_strided_slice %10 {offsets = [128, 0], sizes = [64, 64], strides = [1, 1]} : vector<512x64xf32> to vector<64x64xf32>
    %15 = arith.maximumf %13, %14 : vector<64x64xf32>
    %16 = vector.extract_strided_slice %10 {offsets = [192, 0], sizes = [64, 64], strides = [1, 1]} : vector<512x64xf32> to vector<64x64xf32>
    %17 = arith.maximumf %15, %16 : vector<64x64xf32>
    %18 = vector.extract_strided_slice %10 {offsets = [256, 0], sizes = [64, 64], strides = [1, 1]} : vector<512x64xf32> to vector<64x64xf32>
    %19 = arith.maximumf %17, %18 : vector<64x64xf32>
    %20 = vector.extract_strided_slice %10 {offsets = [320, 0], sizes = [64, 64], strides = [1, 1]} : vector<512x64xf32> to vector<64x64xf32>
    %21 = arith.maximumf %19, %20 : vector<64x64xf32>
    %22 = vector.extract_strided_slice %10 {offsets = [384, 0], sizes = [64, 64], strides = [1, 1]} : vector<512x64xf32> to vector<64x64xf32>
    %23 = arith.maximumf %21, %22 : vector<64x64xf32>
    %24 = vector.extract_strided_slice %10 {offsets = [448, 0], sizes = [64, 64], strides = [1, 1]} : vector<512x64xf32> to vector<64x64xf32>
    %25 = arith.maximumf %23, %24 : vector<64x64xf32>
    %c0_8 = arith.constant 0 : index
    %c0_9 = arith.constant 0 : index
    %26 = vector.load %arg5[%c0_8, %c0_9] : memref<64x64xf32, #tpu.memory_space<vmem>>, vector<64x64xf32>
    tpu.vector_store %arg5[%c0_8, %c0_9], %25 {strides = array<i32>} : memref<64x64xf32, #tpu.memory_space<vmem>>, vector<64x64xf32>,
    return
  }
  func.func @transform_0(%arg0: i32) -> (i32, i32) {
    %c0_i32 = arith.constant 0 : i32
    %c0_i32_0 = arith.constant 0 : i32
    %c0_i32_1 = arith.constant 0 : i32
    return %c0_i32, %c0_i32_0 : i32, i32
  }
  func.func @transform_1(%arg0: i32) -> (i32, i32) {
    %c0_i32 = arith.constant 0 : i32
    %c0_i32_0 = arith.constant 0 : i32
    %c0_i32_1 = arith.constant 0 : i32
    return %c0_i32, %c0_i32_0 : i32, i32
  }
  func.func @transform_2(%arg0: i32) -> (i32, i32) {
    %c0_i32 = arith.constant 0 : i32
    %c0_i32_0 = arith.constant 0 : i32
    %c0_i32_1 = arith.constant 0 : i32
    return %c0_i32, %c0_i32_0 : i32, i32
  }
  func.func @transform_3(%arg0: i32) -> (i32, i32) {
    %c0_i32 = arith.constant 0 : i32
    %c0_i32_0 = arith.constant 0 : i32
    %c0_i32_1 = arith.constant 0 : i32
    return %c0_i32, %c0_i32_0 : i32, i32
  }
  func.func @transform_4(%arg0: i32) -> (i32, i32) {
    %c0_i32 = arith.constant 0 : i32
    %c0_i32_0 = arith.constant 0 : i32
    %c0_i32_1 = arith.constant 0 : i32
    return %c0_i32, %c0_i32_0 : i32, i32
  }
}

</mosaic_0001>

<bundles_post_ra>
// kernel: tpu_custom_call.1
= control target key start
LH: loop header
LB: loop body
LE: loop exit
PB: predicated region body
PF: predicated region fallthrough
CT: control target
= control target key end

     0   :  { %9 = vsyncpa [#allocation3], 0  ;;  %s1594_s0 = inlined_call_operand.hbm [shape: bf16[512,128], index: 0, kind: input, shape index: {}]   ;;  %s1595_s1 = inlined_call_operand.vmem [shape: bf16[128,64], index: 1, kind: input, shape index: {}]   ;;  %s1596_s2 = inlined_call_operand.vmem [shape: f32[1,64], index: 2, kind: input, shape index: {}]   ;;  %s1597_s3 = inlined_call_operand.vmem [shape: f32[1,64], index: 3, kind: input, shape index: {}]   ;;  %s1598_s4 = inlined_call_operand.hbm [shape: f32[64,64], index: 4, kind: output, shape index: {}]  }
   0x1   :  { %10 = vsyncpa [#allocation4], 0  ;;  %s1202_s15 = smov [#allocation2]   ;;  %s1154_s19 = scalar_lea.hbm %s1594_s0, 4096 }
   0x2   :  { %s16_s16 = sshll.u32 %s1202_s15, 4  ;;  %p1155_p0 = scmp.ne.s32.totalorder %s1594_s0, %s1154_s19  ;;  %s17_s16 = int_to_ptr.vmem [resolvable:$true] %s16_s16 }
   0x3   :  { %p1158_p1 = scmp.lt.u32.totalorder %s1154_s19, %s1594_s0 }
   0x5   :  { %p1160_p2 = pnand %p1158_p1, %p1155_p0 }
   0x7   :  { %1163 = shalt.err (!%p1160_p2)
}
   0x8   :  { %s1164_s24 = scalar_lea.vmem %s17_s16, 4096  ;;  %p1169_p4 = scmp.lt.s32.totalorder %s17_s16, %s17_s16 }
   0x9   :  { %p1165_p3 = scmp.ne.s32.totalorder %s17_s16, %s1164_s24  ;;  %p1170_p5 = scmp.lt.s32.totalorder %s1164_s24, %s1164_s24 }
   0xb   :  { %p1171_p6 = por %p1170_p5, %p1169_p4 }
   0xd   :  { %p1172_p7 = pnand %p1171_p6, %p1165_p3 }
   0xf   :  { %1175 = shalt.err (!%p1172_p7)
}
  0x10   :  { %s1203_s25 = smov 64   ;;  %s1204_s26 = smov 4  }
  0x11   :  { %22 = dma.hbm_to_vmem [thread:$0]  %s1594_s0, 4096, %s17_s16, [#allocation3], %s1203_s25, %s1203_s25, %s1204_s26  }
  0x12   :  { %1198 = dma.done.wait [#allocation3], 4096  }
  0x13   :  { %1199 = vsyncadd [#allocation3], 4294963200  ;;  %v1114_v0 = vld [vmem:[%s1595_s1] sm:$0xff]   ;;  %v1115_v1 = vld [vmem:[%s1595_s1 + $0x8] sm:$0xff]   ;;  %vm904_vm0 = vcmask 523264  }
  0x14   :  { %1012 = vmatprep.subr.bf16.mxu0 %v1114_v0  ;;  %1092 = vmatprep.subr.bf16.mxu1 %v1114_v0  ;;  %v1116_v2 = vld [vmem:[%s1595_s1 + $0x10] sm:$0xff]   ;;  %v1117_v3 = vld [vmem:[%s1595_s1 + $0x18] sm:$0xff]   ;;  %v1122_v4 = vld [vmem:[#allocation2] sm:$0xff]  }
  0x15   :  { %1013 = vmatpush3.bf16.msra.mxu0 %v1114_v0  ;;  %1100 = vmatpush3.bf16.msra.mxu1 %v1114_v0  ;;  %v1124_v5 = vld [vmem:[#allocation2 + $0x80] sm:$0xff]   ;;  %v1119_v7 = vld [vmem:[%s1595_s1 + $0x28] sm:$0xff]   ;;  %v1120_v8 = vld [vmem:[%s1595_s1 + $0x30] sm:$0xff]  }
  0x16   :  { %1014 = vmatprep.subr.bf16.mxu0 %v1115_v1  ;;  %1093 = vmatprep.subr.bf16.mxu1 %v1115_v1  ;;  %v1118_v6 = vld [vmem:[%s1595_s1 + $0x20] sm:$0xff]   ;;  %v1121_v9 = vld [vmem:[%s1595_s1 + $0x38] sm:$0xff]   ;;  %v1123_v10 = vld [vmem:[#allocation2 + $0x8] sm:$0xff]  }
  0x17   :  { %1028 = vmatprep.mubr.bf16.mxu0 %v1122_v4  ;;  %1060 = vmatprep.mubr.bf16.mxu1 %v1124_v5  ;;  %v1125_v11 = vld [vmem:[#allocation2 + $0x88] sm:$0xff]   ;;  %v1126_v12 = vld [vmem:[#allocation2 + $0x10] sm:$0xff]   ;;  %v1127_v14 = vld [vmem:[#allocation2 + $0x18] sm:$0xff]  }
  0x18   :  { %v1128_v13 = vld [vmem:[#allocation2 + $0x90] sm:$0xff]   ;;  %v1129_v15 = vld [vmem:[#allocation2 + $0x98] sm:$0xff]   ;;  %v1130_v16 = vld [vmem:[#allocation2 + $0x20] sm:$0xff]  }
  0x19   :  { %1015 = vmatpush3.bf16.msra.mxu0 %v1115_v1  ;;  %1101 = vmatpush3.bf16.msra.mxu1 %v1115_v1  ;;  %v1132_v17 = vld [vmem:[#allocation2 + $0xa0] sm:$0xff]   ;;  %v1131_v18 = vld [vmem:[#allocation2 + $0x28] sm:$0xff]   ;;  %v1134_v20 = vld [vmem:[#allocation2 + $0x30] sm:$0xff]  }
  0x1a   :  { %1016 = vmatprep.subr.bf16.mxu0 %v1116_v2  ;;  %1094 = vmatprep.subr.bf16.mxu1 %v1116_v2  ;;  %v1133_v19 = vld [vmem:[#allocation2 + $0xa8] sm:$0xff]   ;;  %v1136_v21 = vld [vmem:[#allocation2 + $0xb0] sm:$0xff]   ;;  %v1135_v22 = vld [vmem:[#allocation2 + $0x38] sm:$0xff]  }
  0x1b   :  { %v1137_v23 = vld [vmem:[#allocation2 + $0xb8] sm:$0xff]   ;;  %v1138_v24 = vld [vmem:[#allocation2 + $0x40] sm:$0xff]   ;;  %v1139_v26 = vld [vmem:[#allocation2 + $0x48] sm:$0xff]  }
  0x1c   :  { %v1140_v25 = vld [vmem:[#allocation2 + $0xc0] sm:$0xff]   ;;  %v1141_v27 = vld [vmem:[#allocation2 + $0xc8] sm:$0xff]   ;;  %v1142_v28 = vld [vmem:[#allocation2 + $0x50] sm:$0xff]  }
  0x1d   :  { %1017 = vmatpush3.bf16.msra.mxu0 %v1116_v2  ;;  %1102 = vmatpush3.bf16.msra.mxu1 %v1116_v2  ;;  %v1144_v29 = vld [vmem:[#allocation2 + $0xd0] sm:$0xff]   ;;  %v1143_v30 = vld [vmem:[#allocation2 + $0x58] sm:$0xff]   ;;  %v1146_v32 = vld [vmem:[#allocation2 + $0x60] sm:$0xff]  }
  0x1e   :  { %1018 = vmatprep.subr.bf16.mxu0 %v1117_v3  ;;  %1095 = vmatprep.subr.bf16.mxu1 %v1117_v3  ;;  %v1145_v31 = vld [vmem:[#allocation2 + $0xd8] sm:$0xff]   ;;  %v1148_v33 = vld [vmem:[#allocation2 + $0xe0] sm:$0xff]   ;;  %v1147_v34 = vld [vmem:[#allocation2 + $0x68] sm:$0xff]  }
  0x1f   :  { %v1149_v35 = vld [vmem:[#allocation2 + $0xe8] sm:$0xff]   ;;  %v1150_v36 = vld [vmem:[#allocation2 + $0x70] sm:$0xff]   ;;  %v1151_v38 = vld [vmem:[#allocation2 + $0x78] sm:$0xff]  }
  0x20   :  { %v1152_v37 = vld [vmem:[#allocation2 + $0xf0] sm:$0xff]   ;;  %v1153_v39 = vld [vmem:[#allocation2 + $0xf8] sm:$0xff]   ;;  %v1272_v48 = vld [vmem:[%s1596_s2] ss:$0 sm:$0xff]  ;;  %s1205_s2 = smov [#allocation5]  }
  0x21   :  { %1019 = vmatpush3.bf16.msra.mxu0 %v1117_v3  ;;  %1103 = vmatpush3.bf16.msra.mxu1 %v1117_v3  ;;  %v1279_v51 = vld [vmem:[%s1597_s3] ss:$0 sm:$0xff]  ;;  %s918_s3 = sshll.u32 %s1205_s2, 4  ;;  %s919_s3 = int_to_ptr.vmem [resolvable:$true] %s918_s3 }
  0x22   :  { %1020 = vmatprep.subr.bf16.mxu0 %v1118_v6  ;;  %1096 = vmatprep.subr.bf16.mxu1 %v1118_v6  ;;  %s1176_s21 = scalar_lea.vmem %s919_s3, 1024  ;;  %p1181_p9 = scmp.lt.s32.totalorder %s919_s3, %s919_s3 }
  0x23   :  { %p1177_p8 = scmp.ne.s32.totalorder %s919_s3, %s1176_s21  ;;  %p1182_p10 = scmp.lt.s32.totalorder %s1176_s21, %s1176_s21 }
  0x25   :  { %1021 = vmatpush3.bf16.msra.mxu0 %v1118_v6  ;;  %1104 = vmatpush3.bf16.msra.mxu1 %v1118_v6  ;;  %p1183_p11 = por %p1182_p10, %p1181_p9 }
  0x26   :  { %1022 = vmatprep.subr.bf16.mxu0 %v1119_v7  ;;  %1097 = vmatprep.subr.bf16.mxu1 %v1119_v7 }
  0x27   :  { %p1184_p12 = pnand %p1183_p11, %p1177_p8 }
  0x29   :  { %1023 = vmatpush3.bf16.msra.mxu0 %v1119_v7  ;;  %1105 = vmatpush3.bf16.msra.mxu1 %v1119_v7 }
  0x2a   :  { %1024 = vmatprep.subr.bf16.mxu0 %v1120_v8  ;;  %1098 = vmatprep.subr.bf16.mxu1 %v1120_v8 }
  0x2d   :  { %1025 = vmatpush3.bf16.msra.mxu0 %v1120_v8  ;;  %1106 = vmatpush3.bf16.msra.mxu1 %v1120_v8 }
  0x2e   :  { %1026 = vmatprep.subr.bf16.mxu0 %v1121_v9  ;;  %1099 = vmatprep.subr.bf16.mxu1 %v1121_v9 }
  0x31   :  { %1027 = vmatpush3.bf16.msra.mxu0 %v1121_v9  ;;  %1107 = vmatpush3.bf16.msra.mxu1 %v1121_v9 }
  0x34   :  { %1029 = vmatmul.mubr.bf16.vlgmr.msra.gmra.mrb[0].mxu0 %v1123_v10  ;;  %1061 = vmatmul.mubr.bf16.vlgmr.msra.gmra.mrb[0].mxu1 %v1125_v11 }
  0x35   :  { %1032 = vmatprep.mubr.bf16.mxu0 %v1126_v12  ;;  %1064 = vmatprep.mubr.bf16.mxu1 %v1128_v13 }
  0x3c   :  { %1033 = vmatmul.mubr.bf16.gmra.mrb[4].mxu0 %v1127_v14  ;;  %1065 = vmatmul.mubr.bf16.gmra.mrb[4].mxu1 %v1129_v15 }
  0x3d   :  { %1036 = vmatprep.mubr.bf16.mxu0 %v1130_v16  ;;  %1068 = vmatprep.mubr.bf16.mxu1 %v1132_v17 }
  0x44   :  { %1037 = vmatmul.mubr.bf16.gmra.mrb[8].mxu0 %v1131_v18  ;;  %1069 = vmatmul.mubr.bf16.gmra.mrb[8].mxu1 %v1133_v19 }
  0x45   :  { %1040 = vmatprep.mubr.bf16.mxu0 %v1134_v20  ;;  %1072 = vmatprep.mubr.bf16.mxu1 %v1136_v21 }
  0x4c   :  { %1041 = vmatmul.mubr.bf16.gmra.mrb[12].mxu0 %v1135_v22  ;;  %1073 = vmatmul.mubr.bf16.gmra.mrb[12].mxu1 %v1137_v23 }
  0x4d   :  { %1044 = vmatprep.mubr.bf16.mxu0 %v1138_v24  ;;  %1076 = vmatprep.mubr.bf16.mxu1 %v1140_v25 }
  0x54   :  { %1045 = vmatmul.mubr.bf16.gmra.mrb[16].mxu0 %v1139_v26  ;;  %1077 = vmatmul.mubr.bf16.gmra.mrb[16].mxu1 %v1141_v27 }
  0x55   :  { %1048 = vmatprep.mubr.bf16.mxu0 %v1142_v28  ;;  %1080 = vmatprep.mubr.bf16.mxu1 %v1144_v29 }
  0x5c   :  { %1049 = vmatmul.mubr.bf16.gmra.mrb[20].mxu0 %v1143_v30  ;;  %1081 = vmatmul.mubr.bf16.gmra.mrb[20].mxu1 %v1145_v31 }
  0x5d   :  { %1052 = vmatprep.mubr.bf16.mxu0 %v1146_v32  ;;  %1084 = vmatprep.mubr.bf16.mxu1 %v1148_v33 }
  0x64   :  { %1053 = vmatmul.mubr.bf16.gmra.mrb[24].mxu0 %v1147_v34  ;;  %1085 = vmatmul.mubr.bf16.gmra.mrb[24].mxu1 %v1149_v35 }
  0x65   :  { %1056 = vmatprep.mubr.bf16.mxu0 %v1150_v36  ;;  %1088 = vmatprep.mubr.bf16.mxu1 %v1152_v37 }
  0x6c   :  { %1057 = vmatmul.mubr.bf16.gmra.mrb[28].mxu0 %v1151_v38  ;;  %1089 = vmatmul.mubr.bf16.gmra.mrb[28].mxu1 %v1153_v39 }
 0x107   :  { %v1030_v40 = vpop.f32.mrb[0].mxu0  ;;  %v1062_v41 = vpop.f32.mrb[0].mxu1 }
 0x108   :  { %v387_v42 = vpop.f32.mrb[1].mxu0  ;;  %v515_v43 = vpop.f32.mrb[1].mxu1  ;;  %v651_v49 = vmul.f32 %v1030_v40, %v1272_v48  ;;  %v683_v50 = vmul.f32 %v1062_v41, %v1272_v48 }
 0x109   :  { %v1031_v44 = vpop.f32.mrb[2].mxu0  ;;  %v1063_v45 = vpop.f32.mrb[2].mxu1  ;;  %v649_v52 = vmul.f32 %v1272_v48, %v387_v42  ;;  %v681_v54 = vmul.f32 %v1272_v48, %v515_v43 }
 0x10a   :  { %v390_v46 = vpop.f32.mrb[3].mxu0  ;;  %v518_v47 = vpop.f32.mrb[3].mxu1  ;;  %v652_v53 = vmul.f32 %v1031_v44, %v1272_v48  ;;  %v684_v58 = vmul.f32 %v1063_v45, %v1272_v48  ;;  %v722_v0 = vadd.f32 %v1279_v51, %v651_v49  ;;  %v1289_v1 = vadd.f32 %v1279_v51, %v683_v50 }
 0x10b   :  { %v650_v57 = vmul.f32 %v1272_v48, %v390_v46  ;;  %v682_v61 = vmul.f32 %v1272_v48, %v518_v47  ;;  %v720_v4 = vadd.f32 %v1279_v51, %v649_v52  ;;  %v1294_v6 = vadd.f32 %v1279_v51, %v681_v54 }
 0x10c   :  { %v723_v5 = vadd.f32 %v1279_v51, %v652_v53  ;;  %v1298_v8 = vadd.f32 %v1279_v51, %v684_v58  ;;  %v786_v11 = vmax.f32 %v722_v0, 0.0  ;;  %v818_v12 = vmax.f32 %v1289_v1, 0.0 }
 0x10d   :  { %v721_v7 = vadd.f32 %v1279_v51, %v650_v57  ;;  %v1302_v10 = vadd.f32 %v1279_v51, %v682_v61  ;;  %v784_v14 = vmax.f32 %v720_v4, 0.0  ;;  %v816_v16 = vmax.f32 %v1294_v6, 0.0 }
 0x10e   :  { %v787_v15 = vmax.f32 %v723_v5, 0.0  ;;  %v819_v21 = vmax.f32 %v1298_v8, 0.0 }
 0x10f   :  { %v1034_v55 = vpop.f32.mrb[4].mxu0  ;;  %v1066_v56 = vpop.f32.mrb[4].mxu1  ;;  %v785_v20 = vmax.f32 %v721_v7, 0.0  ;;  %v817_v27 = vmax.f32 %v1302_v10, 0.0 }
 0x110   :  { %v403_v59 = vpop.f32.mrb[5].mxu0  ;;  %v531_v60 = vpop.f32.mrb[5].mxu1  ;;  %v655_v9 = vmul.f32 %v1034_v55, %v1272_v48  ;;  %v687_v13 = vmul.f32 %v1066_v56, %v1272_v48 }
 0x111   :  { %v1035_v62 = vpop.f32.mrb[6].mxu0  ;;  %v1067_v63 = vpop.f32.mrb[6].mxu1  ;;  %v653_v17 = vmul.f32 %v1272_v48, %v403_v59  ;;  %v685_v22 = vmul.f32 %v1272_v48, %v531_v60 }
 0x112   :  { %v406_v2 = vpop.f32.mrb[7].mxu0  ;;  %v534_v3 = vpop.f32.mrb[7].mxu1  ;;  %v1312_v26 = vadd.f32 %v1279_v51, %v655_v9  ;;  %v656_v28 = vmul.f32 %v1035_v62, %v1272_v48  ;;  %v1318_v32 = vadd.f32 %v1279_v51, %v687_v13  ;;  %v688_v33 = vmul.f32 %v1067_v63, %v1272_v48 }
 0x113   :  { %v724_v38 = vadd.f32 %v1279_v51, %v653_v17  ;;  %v654_v39 = vmul.f32 %v1272_v48, %v406_v2  ;;  %v1328_v42 = vadd.f32 %v1279_v51, %v685_v22  ;;  %v686_v44 = vmul.f32 %v1272_v48, %v534_v3 }
 0x114   :  { %v790_v46 = vmax.f32 %v1312_v26, 0.0  ;;  %v727_v47 = vadd.f32 %v1279_v51, %v656_v28  ;;  %v1337_v53 = vadd.f32 %v1279_v51, %v688_v33 }
 0x115   :  { %v788_v56 = vmax.f32 %v724_v38, 0.0  ;;  %v725_v57 = vadd.f32 %v1279_v51, %v654_v39  ;;  %v1350_v5 = vadd.f32 %v1279_v51, %v686_v44 }
 0x117   :  { %v1038_v18 = vpop.f32.mrb[8].mxu0  ;;  %v1070_v19 = vpop.f32.mrb[8].mxu1  ;;  %v789_v33 = vmax.f32 %v725_v57, 0.0 }
 0x118   :  { %v659_v23 = vmul.f32 %v1038_v18, %v1272_v48  ;;  %v419_v24 = vpop.f32.mrb[9].mxu0  ;;  %v547_v25 = vpop.f32.mrb[9].mxu1  ;;  %v691_v0 = vmul.f32 %v1070_v19, %v1272_v48 }
 0x119   :  { %v657_v29 = vmul.f32 %v1272_v48, %v419_v24  ;;  %v1039_v30 = vpop.f32.mrb[10].mxu0  ;;  %v1071_v31 = vpop.f32.mrb[10].mxu1  ;;  %v689_v9 = vmul.f32 %v1272_v48, %v547_v25  ;;  %v791_v24 = vmax.f32 %v727_v47, 0.0 }
 0x11a   :  { %v730_v34 = vadd.f32 %v1279_v51, %v659_v23  ;;  %v660_v35 = vmul.f32 %v1039_v30, %v1272_v48  ;;  %v422_v36 = vpop.f32.mrb[11].mxu0  ;;  %v550_v37 = vpop.f32.mrb[11].mxu1  ;;  %v1364_v28 = vadd.f32 %v1279_v51, %v691_v0 }
 0x11b   :  { %v728_v40 = vadd.f32 %v1279_v51, %v657_v29  ;;  %v658_v41 = vmul.f32 %v1272_v48, %v422_v36  ;;  %v690_v18 = vmul.f32 %v1272_v48, %v550_v37 }
 0x11c   :  { %v794_v43 = vmax.f32 %v730_v34, 0.0  ;;  %v731_v45 = vadd.f32 %v1279_v51, %v660_v35  ;;  %v1369_v34 = vadd.f32 %v1279_v51, %v689_v9 }
 0x11d   :  { %v792_v49 = vmax.f32 %v728_v40, 0.0  ;;  %v729_v50 = vadd.f32 %v1279_v51, %v658_v41  ;;  %v1378_v39 = vadd.f32 %v1279_v51, %v690_v18 }
 0x11e   :  { %v1339_v54 = vmax.f32 %v786_v11, %v794_v43  ;;  %v795_v55 = vmax.f32 %v731_v45, 0.0 }
 0x11f   :  { %v1342_v58 = vmax.f32 %v784_v14, %v792_v49  ;;  %v793_v59 = vmax.f32 %v729_v50, 0.0  ;;  %v1042_v60 = vpop.f32.mrb[12].mxu0  ;;  %v1074_v61 = vpop.f32.mrb[12].mxu1  ;;  %v826_v50 = vmax.f32 %v1364_v28, 0.0 }
 0x120   :  { %v1345_v63 = vmax.f32 %v787_v15, %v795_v55  ;;  %v663_v2 = vmul.f32 %v1042_v60, %v1272_v48  ;;  %v435_v3 = vpop.f32.mrb[13].mxu0  ;;  %v563_v4 = vpop.f32.mrb[13].mxu1  ;;  %v692_v15 = vmul.f32 %v1071_v31, %v1272_v48  ;;  %v695_v31 = vmul.f32 %v1074_v61, %v1272_v48 }
 0x121   :  { %v1352_v7 = vmax.f32 %v785_v20, %v793_v59  ;;  %v661_v11 = vmul.f32 %v1272_v48, %v435_v3  ;;  %v1043_v13 = vpop.f32.mrb[14].mxu0  ;;  %v1075_v14 = vpop.f32.mrb[14].mxu1  ;;  %v693_v45 = vmul.f32 %v1272_v48, %v563_v4  ;;  %v824_v61 = vmax.f32 %v1369_v34, 0.0 }
 0x122   :  { %v734_v17 = vadd.f32 %v1279_v51, %v663_v2  ;;  %v664_v19 = vmul.f32 %v1043_v13, %v1272_v48  ;;  %v438_v22 = vpop.f32.mrb[15].mxu0  ;;  %v566_v23 = vpop.f32.mrb[15].mxu1  ;;  %v1373_v37 = vadd.f32 %v1279_v51, %v692_v15  ;;  %v696_v0 = vmul.f32 %v1075_v14, %v1272_v48 }
 0x123   :  { %v732_v26 = vadd.f32 %v1279_v51, %v661_v11  ;;  %v662_v25 = vmul.f32 %v1272_v48, %v438_v22  ;;  %v694_v22 = vmul.f32 %v1272_v48, %v566_v23 }
 0x124   :  { %v798_v29 = vmax.f32 %v734_v17, 0.0  ;;  %v735_v30 = vadd.f32 %v1279_v51, %v664_v19  ;;  %v827_v9 = vmax.f32 %v1373_v37, 0.0  ;;  %v1401_v19 = vadd.f32 %v1279_v51, %v693_v45 }
 0x125   :  { %v796_v35 = vmax.f32 %v732_v26, 0.0  ;;  %v733_v36 = vadd.f32 %v1279_v51, %v662_v25 }
 0x126   :  { %v1375_v38 = vmax.f32 %v790_v46, %v798_v29  ;;  %v799_v40 = vmax.f32 %v735_v30, 0.0  ;;  %v1388_v46 = vadd.f32 %v1279_v51, %v695_v31  ;;  %v1410_v31 = vadd.f32 %v1279_v51, %v696_v0 }
 0x127   :  { %v1381_v43 = vmax.f32 %v788_v56, %v796_v35  ;;  %v797_v44 = vmax.f32 %v733_v36, 0.0  ;;  %v1046_v47 = vpop.f32.mrb[16].mxu0  ;;  %v1078_v49 = vpop.f32.mrb[16].mxu1 }
 0x128   :  { %v1385_v55 = vmax.f32 %v791_v24, %v799_v40  ;;  %v667_v57 = vmul.f32 %v1046_v47, %v1272_v48  ;;  %v451_v59 = vpop.f32.mrb[17].mxu0  ;;  %v579_v60 = vpop.f32.mrb[17].mxu1  ;;  %v699_v30 = vmul.f32 %v1078_v49, %v1272_v48  ;;  %v1421_v49 = vadd.f32 %v1279_v51, %v694_v22 }
 0x129   :  { %v1392_v56 = vmax.f32 %v789_v33, %v797_v44  ;;  %v665_v2 = vmul.f32 %v1272_v48, %v451_v59  ;;  %v1047_v3 = vpop.f32.mrb[18].mxu0  ;;  %v1079_v4 = vpop.f32.mrb[18].mxu1  ;;  %v697_v36 = vmul.f32 %v1272_v48, %v579_v60 }
 0x12a   :  { %v738_v13 = vadd.f32 %v1279_v51, %v667_v57  ;;  %v668_v15 = vmul.f32 %v1047_v3, %v1272_v48  ;;  %v454_v17 = vpop.f32.mrb[19].mxu0  ;;  %v582_v18 = vpop.f32.mrb[19].mxu1  ;;  %v700_v44 = vmul.f32 %v1079_v4, %v1272_v48 }
 0x12b   :  { %v736_v14 = vadd.f32 %v1279_v51, %v665_v2  ;;  %v666_v24 = vmul.f32 %v1272_v48, %v454_v17  ;;  %v698_v45 = vmul.f32 %v1272_v48, %v582_v18  ;;  %v1439_v18 = vadd.f32 %v1279_v51, %v697_v36 }
 0x12c   :  { %v802_v25 = vmax.f32 %v738_v13, 0.0  ;;  %v739_v29 = vadd.f32 %v1279_v51, %v668_v15 }
 0x12d   :  { %v800_v33 = vmax.f32 %v736_v14, 0.0  ;;  %v737_v35 = vadd.f32 %v1279_v51, %v666_v24  ;;  %v1443_v24 = vadd.f32 %v1279_v51, %v700_v44 }
 0x12e   :  { %v1415_v23 = vmax.f32 %v1339_v54, %v802_v25  ;;  %v803_v40 = vmax.f32 %v739_v29, 0.0  ;;  %v1430_v54 = vadd.f32 %v1279_v51, %v699_v30  ;;  %v1447_v29 = vadd.f32 %v1279_v51, %v698_v45 }
 0x12f   :  { %v1424_v57 = vmax.f32 %v1342_v58, %v800_v33  ;;  %v801_v59 = vmax.f32 %v737_v35, 0.0  ;;  %v1050_v0 = vpop.f32.mrb[20].mxu0  ;;  %v1082_v2 = vpop.f32.mrb[20].mxu1 }
 0x130   :  { %v1427_v60 = vmax.f32 %v1345_v63, %v803_v40  ;;  %v671_v3 = vmul.f32 %v1050_v0, %v1272_v48  ;;  %v467_v4 = vpop.f32.mrb[21].mxu0  ;;  %v703_v13 = vmul.f32 %v1082_v2, %v1272_v48  ;;  %v595_v15 = vpop.f32.mrb[21].mxu1  ;;  %v834_v44 = vmax.f32 %v1430_v54, 0.0 }
 0x131   :  { %v1436_v58 = vmax.f32 %v1352_v7, %v801_v59  ;;  %v669_v63 = vmul.f32 %v1272_v48, %v467_v4  ;;  %v1051_v22 = vpop.f32.mrb[22].mxu0  ;;  %v1083_v14 = vpop.f32.mrb[22].mxu1  ;;  %v701_v59 = vmul.f32 %v1272_v48, %v595_v15 }
 0x132   :  { %v742_v25 = vadd.f32 %v1279_v51, %v671_v3  ;;  %v672_v30 = vmul.f32 %v1051_v22, %v1272_v48  ;;  %v470_v33 = vpop.f32.mrb[23].mxu0  ;;  %v598_v7 = vpop.f32.mrb[23].mxu1  ;;  %v1457_v45 = vadd.f32 %v1279_v51, %v703_v13  ;;  %v704_v35 = vmul.f32 %v1083_v14, %v1272_v48 }
 0x133   :  { %v740_v36 = vadd.f32 %v1279_v51, %v669_v63  ;;  %v670_v40 = vmul.f32 %v1272_v48, %v470_v33  ;;  %v1471_v17 = vadd.f32 %v1279_v51, %v701_v59 }
 0x134   :  { %v806_v0 = vmax.f32 %v742_v25, 0.0  ;;  %v743_v2 = vadd.f32 %v1279_v51, %v672_v30  ;;  %v1484_v59 = vadd.f32 %v1279_v51, %v704_v35 }
 0x135   :  { %v804_v4 = vmax.f32 %v740_v36, 0.0  ;;  %v741_v22 = vadd.f32 %v1279_v51, %v670_v40  ;;  %v702_v40 = vmul.f32 %v1272_v48, %v598_v7 }
 0x136   :  { %v1464_v33 = vmax.f32 %v1375_v38, %v806_v0  ;;  %v807_v25 = vmax.f32 %v743_v2, 0.0 }
 0x137   :  { %v1468_v30 = vmax.f32 %v1381_v43, %v804_v4  ;;  %v805_v13 = vmax.f32 %v741_v22, 0.0  ;;  %v1054_v36 = vpop.f32.mrb[24].mxu0  ;;  %v1086_v47 = vpop.f32.mrb[24].mxu1 }
 0x138   :  { %v1475_v14 = vmax.f32 %v1385_v55, %v807_v25  ;;  %v675_v0 = vmul.f32 %v1054_v36, %v1272_v48  ;;  %v483_v41 = vpop.f32.mrb[25].mxu0  ;;  %v707_v2 = vmul.f32 %v1086_v47, %v1272_v48  ;;  %v611_v43 = vpop.f32.mrb[25].mxu1 }
 0x139   :  { %v1481_v4 = vmax.f32 %v1392_v56, %v805_v13  ;;  %v673_v7 = vmul.f32 %v1272_v48, %v483_v41  ;;  %v1055_v22 = vpop.f32.mrb[26].mxu0  ;;  %v705_v55 = vmul.f32 %v1272_v48, %v611_v43  ;;  %v1087_v25 = vpop.f32.mrb[26].mxu1 }
 0x13a   :  { %v746_v38 = vadd.f32 %v1279_v51, %v675_v0  ;;  %v676_v36 = vmul.f32 %v1055_v22, %v1272_v48  ;;  %v486_v26 = vpop.f32.mrb[27].mxu0  ;;  %v778_v47 = vadd.f32 %v1279_v51, %v707_v2  ;;  %v708_v20 = vmul.f32 %v1087_v25, %v1272_v48  ;;  %v614_v56 = vpop.f32.mrb[27].mxu1 }
 0x13b   :  { %v744_v13 = vadd.f32 %v1279_v51, %v673_v7  ;;  %v674_v35 = vmul.f32 %v1272_v48, %v486_v26  ;;  %v776_v41 = vadd.f32 %v1279_v51, %v705_v55  ;;  %v706_v62 = vmul.f32 %v1272_v48, %v614_v56 }
 0x13c   :  { %v810_v52 = vmax.f32 %v746_v38, 0.0  ;;  %v747_v0 = vadd.f32 %v1279_v51, %v676_v36  ;;  %v779_v22 = vadd.f32 %v1279_v51, %v708_v20  ;;  %v1500_v2 = vadd.f32 %v1279_v51, %v702_v40 }
 0x13d   :  { %v808_v25 = vmax.f32 %v744_v13, 0.0  ;;  %v745_v15 = vadd.f32 %v1279_v51, %v674_v35  ;;  %v777_v26 = vadd.f32 %v1279_v51, %v706_v62  ;;  %v842_v56 = vmax.f32 %v778_v47, 0.0 }
 0x13e   :  { %v866_v7 = vmax.f32 %v1415_v23, %v810_v52  ;;  %v811_v55 = vmax.f32 %v747_v0, 0.0  ;;  %v840_v63 = vmax.f32 %v776_v41, 0.0  ;;  %v843_v36 = vmax.f32 %v779_v22, 0.0 }
 0x13f   :  { %v864_v38 = vmax.f32 %v1424_v57, %v808_v25  ;;  %v809_v43 = vmax.f32 %v745_v15, 0.0  ;;  %v1058_v11 = vpop.f32.mrb[28].mxu0  ;;  %v841_v20 = vmax.f32 %v777_v26, 0.0  ;;  %v1090_v3 = vpop.f32.mrb[28].mxu1  ;;  %v1599_v26 = vmax.f32 %v1439_v18, 0.0 }
 0x140   :  { %v874_v40 = vmax.f32 %v866_v7, %v818_v12  ;;  %v867_v13 = vmax.f32 %v1427_v60, %v811_v55  ;;  %v679_v35 = vmul.f32 %v1058_v11, %v1272_v48  ;;  %v499_v62 = vpop.f32.mrb[29].mxu0  ;;  %v711_v52 = vmul.f32 %v1090_v3, %v1272_v48  ;;  %v627_v23 = vpop.f32.mrb[29].mxu1 }
 0x141   :  { %v872_v47 = vmax.f32 %v864_v38, %v816_v16  ;;  %v865_v57 = vmax.f32 %v1436_v58, %v809_v43  ;;  %v677_v15 = vmul.f32 %v1272_v48, %v499_v62  ;;  %v1059_v41 = vpop.f32.mrb[30].mxu0  ;;  %v709_v0 = vmul.f32 %v1272_v48, %v627_v23  ;;  %v1091_v1 = vpop.f32.mrb[30].mxu1 }
 0x142   :  { %v875_v12 = vmax.f32 %v867_v13, %v819_v21  ;;  %v882_v11 = vmax.f32 %v874_v40, %v826_v50  ;;  %v750_v60 = vadd.f32 %v1279_v51, %v679_v35  ;;  %v680_v3 = vmul.f32 %v1059_v41, %v1272_v48  ;;  %v502_v6 = vpop.f32.mrb[31].mxu0  ;;  %v630_v16 = vpop.f32.mrb[31].mxu1 }
 0x143   :  { %v873_v58 = vmax.f32 %v865_v57, %v817_v27  ;;  %v880_v43 = vmax.f32 %v872_v47, %v824_v61  ;;  %v748_v22 = vadd.f32 %v1279_v51, %v677_v15  ;;  %v678_v8 = vmul.f32 %v1272_v48, %v502_v6 }
 0x144   :  { %v890_v21 = vmax.f32 %v882_v11, %v834_v44  ;;  %v883_v28 = vmax.f32 %v875_v12, %v827_v9  ;;  %v814_v50 = vmax.f32 %v750_v60, 0.0  ;;  %v751_v25 = vadd.f32 %v1279_v51, %v680_v3 }
 0x145   :  { %v888_v10 = vmax.f32 %v880_v43, %v1599_v26  ;;  %v1600_v27 = vmax.f32 %v1378_v39, 0.0  ;;  %v812_v61 = vmax.f32 %v748_v22, 0.0  ;;  %v749_v7 = vadd.f32 %v1279_v51, %v678_v8 }
 0x146   :  { %v898_v55 = vmax.f32 %v890_v21, %v842_v56  ;;  %v1601_v38 = vmax.f32 %v1443_v24, 0.0  ;;  %v870_v44 = vmax.f32 %v1464_v33, %v814_v50  ;;  %v815_v37 = vmax.f32 %v751_v25, 0.0 }
 0x147   :  { %v881_v34 = vmax.f32 %v873_v58, %v1600_v27  ;;  %v896_v9 = vmax.f32 %v888_v10, %v840_v63  ;;  %v1602_v40 = vmax.f32 %v1447_v29, 0.0  ;;  %v868_v18 = vmax.f32 %v1468_v30, %v812_v61 }
 0x148   :  { %v891_v54 = vmax.f32 %v883_v28, %v1601_v38  ;;  %v813_v35 = vmax.f32 %v749_v7, 0.0  ;;  %907 = vst.msk [vmem:[#allocation5 + $0x10] sm:$0xff] %vm904_vm0, %v898_v55  ;;  %v1603_v62 = vmax.f32 %v1318_v32, 0.0  ;;  %v871_v56 = vmax.f32 %v1475_v14, %v815_v37 }
 0x149   :  { %v889_v13 = vmax.f32 %v881_v34, %v1602_v40  ;;  %v782_v24 = vadd.f32 %v1279_v51, %v711_v52  ;;  %905 = vst.msk [vmem:[#allocation5] sm:$0xff] %vm904_vm0, %v896_v9  ;;  %v1604_v63 = vmax.f32 %v1328_v42, 0.0  ;;  %v780_v30 = vadd.f32 %v1279_v51, %v709_v0 }
 0x14a   :  { %v899_v39 = vmax.f32 %v891_v54, %v843_v36  ;;  %v878_v23 = vmax.f32 %v870_v44, %v1603_v62  ;;  %v869_v47 = vmax.f32 %v1481_v4, %v813_v35  ;;  %v1605_v36 = vmax.f32 %v1337_v53, 0.0 }
 0x14b   :  { %v897_v33 = vmax.f32 %v889_v13, %v841_v20  ;;  %v876_v29 = vmax.f32 %v868_v18, %v1604_v63  ;;  %v846_v57 = vmax.f32 %v782_v24, 0.0  ;;  %v1606_v14 = vmax.f32 %v1388_v46, 0.0 }
 0x14c   :  { %908 = vst.msk [vmem:[#allocation5 + $0x18] sm:$0xff] %vm904_vm0, %v899_v39  ;;  %v879_v32 = vmax.f32 %v871_v56, %v1605_v36  ;;  %v712_v52 = vmul.f32 %v1091_v1, %v1272_v48  ;;  %v1607_v42 = vmax.f32 %v1350_v5, 0.0  ;;  %v844_v41 = vmax.f32 %v780_v30, 0.0 }
 0x14d   :  { %v886_v15 = vmax.f32 %v878_v23, %v1606_v14  ;;  %906 = vst.msk [vmem:[#allocation5 + $0x8] sm:$0xff] %vm904_vm0, %v897_v33  ;;  %v1608_v4 = vmax.f32 %v1401_v19, 0.0  ;;  %v710_v12 = vmul.f32 %v1272_v48, %v630_v16  ;;  %v839_v53 = vmax.f32 %v1484_v59, 0.0 }
 0x14e   :  { %v877_v20 = vmax.f32 %v869_v47, %v1607_v42  ;;  %v1609_v11 = vmax.f32 %v1457_v45, 0.0  ;;  %v783_v46 = vadd.f32 %v1279_v51, %v712_v52  ;;  %v1610_v1 = vmax.f32 %v1410_v31, 0.0 }
 0x14f   :  { %v884_v0 = vmax.f32 %v876_v29, %v1608_v4  ;;  %v837_v6 = vmax.f32 %v1500_v2, 0.0  ;;  %v1611_v5 = vmax.f32 %v1471_v17, 0.0  ;;  %v781_v19 = vadd.f32 %v1279_v51, %v710_v12 }
 0x150   :  { %v894_v60 = vmax.f32 %v886_v15, %v1609_v11  ;;  %v887_v3 = vmax.f32 %v879_v32, %v1610_v1  ;;  %v1612_v43 = vmax.f32 %v1421_v49, 0.0  ;;  %v847_v59 = vmax.f32 %v783_v46, 0.0 }
 0x151   :  { %v892_v58 = vmax.f32 %v884_v0, %v1611_v5  ;;  %v845_v8 = vmax.f32 %v781_v19, 0.0 }
 0x152   :  { %v885_v48 = vmax.f32 %v877_v20, %v1612_v43  ;;  %v902_v16 = vmax.f32 %v894_v60, %v846_v57  ;;  %v895_v22 = vmax.f32 %v887_v3, %v839_v53 }
 0x153   :  { %v900_v45 = vmax.f32 %v892_v58, %v844_v41 }
 0x154   :  { %v893_v21 = vmax.f32 %v885_v48, %v837_v6  ;;  %911 = vst.msk [vmem:[#allocation5 + $0x30] sm:$0xff] %vm904_vm0, %v902_v16  ;;  %v903_v31 = vmax.f32 %v895_v22, %v847_v59 }
 0x155   :  { %909 = vst.msk [vmem:[#allocation5 + $0x20] sm:$0xff] %vm904_vm0, %v900_v45 }
 0x156   :  { %v901_v17 = vmax.f32 %v893_v21, %v845_v8  ;;  %912 = vst.msk [vmem:[#allocation5 + $0x38] sm:$0xff] %vm904_vm0, %v903_v31 }
 0x158   :  { %910 = vst.msk [vmem:[#allocation5 + $0x28] sm:$0xff] %vm904_vm0, %v901_v17 }
 0x159   :  { %1187 = shalt.err (!%p1184_p12)
}
 0x15a   :  { %s1188_s24 = scalar_lea.hbm %s1598_s4, 1024 }
 0x15b   :  { %p1189_p13 = scmp.ne.s32.totalorder %s1598_s4, %s1188_s24  ;;  %p1192_p0 = scmp.lt.u32.totalorder %s1188_s24, %s1598_s4 }
 0x15d   :  { %p1194_p1 = pnand %p1192_p0, %p1189_p13 }
 0x15f   :  { %1197 = shalt.err (!%p1194_p1)
}
 0x160   :  { %s1206_s29 = smov 128   ;;  %s1207_s30 = smov 8  }
 0x161   :  { %924 = dma.vmem_to_hbm [thread:$0]  %s919_s3, 1024, %s1598_s4, [#allocation4], %s1206_s29, %s1206_s29, %s1207_s30  }
 0x162   :  { %1200 = dma.done.wait [#allocation4], 1024  }
 0x163   :  { %1201 = vsyncadd [#allocation4], 4294966272 }
 0x164   :  { %928 = vsyncpa [#allocation3], 1 }
 0x165   :  { %929 = vsyncpa [#allocation4], 1 }

</bundles_post_ra>
